<compile_context>
chip_gen: v7x
topology: tpu7x:2x2x1
jax: 0.10.0
libtpu: 0.0.40
codegen_flags: <defaults>
</compile_context>

<pallas_src>
import math

import jax
import jax.numpy as jnp
from jax.experimental import pallas as pl
from jax.experimental.pallas import tpu as pltpu


def _fader_kernel(ramp_ref, x_ref, o_ref):
    # ramp_ref: VMEM (1, tile_t) float32 -- slope row for this lane block.
    # x_ref:    VMEM (tile_r, tile_t)    -- input rows.
    # o_ref:    VMEM (tile_r, tile_t)    -- output rows.
    x = x_ref[...].astype(jnp.float32)
    o_ref[...] = (x + ramp_ref[...]).astype(o_ref.dtype)


def _dtype_pack(dtype):
    # Sublane packing: rows per 32-bit sublane group.
    isz = jnp.dtype(dtype).itemsize
    return {4: 8, 2: 16, 1: 32}.get(isz, 8)


def _vmem_budgets():
    # Generation-aware VMEM budget (v5e/v6e: 128 MiB, v7x: 64 MiB physical).
    phys = 64 * 1024 * 1024  # conservative fallback
    try:
        phys = int(pltpu.get_tpu_info().vmem_capacity_bytes)
    except Exception:
        pass
    limit = min(phys // 2, 64 * 1024 * 1024)
    limit = max(limit, 16 * 1024 * 1024)
    # Double-buffered in + out = 4 live tile buffers; /8 leaves headroom for
    # the resident ramp row and internal scratch.
    per_buffer = limit // 8
    return limit, per_buffer


def _row_tile(rows, row_bytes, per_buffer, pack):
    # Size the row tile purely by bytes, rounded to the sublane packing.
    tile_r = (per_buffer // max(row_bytes, 1)) // pack * pack
    tile_r = max(pack, tile_r)
    # Keep >= 2 grid steps when rows allow it so v7x can use both TensorCores.
    if rows >= 2 * pack:
        half = ((rows + 1) // 2 + pack - 1) // pack * pack
        tile_r = min(tile_r, half)
    if tile_r >= rows:
        tile_r = rows  # full extent satisfies the (8, 128) block rule
    return tile_r


def random_linear_fader(lms, key, gain=1.0):
    """Apply a random linear fade along the time (last) axis of (B, F, T)."""
    B, F, T = lms.shape
    dtype = lms.dtype
    itemsize = jnp.dtype(dtype).itemsize
    pack = _dtype_pack(dtype)
    vmem_limit, per_buffer = _vmem_budgets()

    # head, tail ~ U[-gain, gain]  (drawn once per call, like np.random.rand).
    ht = jax.random.uniform(key, (2,), dtype=jnp.float32, minval=-gain, maxval=gain)
    head, tail = ht[0], ht[1]
    # Exact reference slope, computed once in f32 in the wrapper (tiny).
    slope = jnp.linspace(head, tail, T, dtype=jnp.float32)

    n_total = B * F * T
    # W = lcm(T, 128): a row of W flat elements holds whole ramp periods.
    W = T * (128 // math.gcd(T, 128))
    use_flat = (T % 128 != 0) and (W <= 32768)

    def _compiler(sem):
        return pltpu.CompilerParams(
            dimension_semantics=sem, vmem_limit_bytes=vmem_limit
        )

    if use_flat:
        # ---- lane-dense flat path (small / unaligned T) -------------------
        reps = W // T
        ramp = jnp.tile(slope, reps).reshape(1, W)

        flat = lms.reshape(-1)
        n_pad = -(-n_total // W) * W
        if n_pad != n_total:
            flat = jnp.pad(flat, (0, n_pad - n_total))
        rows = n_pad // W
        x2 = flat.reshape(rows, W)

        tile_r = _row_tile(rows, W * itemsize, per_buffer, pack)
        grid = (pl.cdiv(rows, tile_r),)

        out2 = pl.pallas_call(
            _fader_kernel,
            out_shape=jax.ShapeDtypeStruct((rows, W), dtype),
            grid_spec=pltpu.PrefetchScalarGridSpec(
                num_scalar_prefetch=0,
                grid=grid,
                in_specs=[
                    pl.BlockSpec((1, W), lambda i: (0, 0)),          # ramp (resident)
                    pl.BlockSpec((tile_r, W), lambda i: (i, 0)),     # x rows
                ],
                out_specs=pl.BlockSpec((tile_r, W), lambda i: (i, 0)),
            ),
            compiler_params=_compiler(("parallel",)),
            input_output_aliases={1: 0},
        )(ramp, x2)

        out_flat = out2.reshape(-1)
        if n_pad != n_total:
            out_flat = out_flat[:n_total]
        return out_flat.reshape(B, F, T)

    # ---- (rows, T) path: T already lane-aligned or too wide to period-tile --
    rows = B * F
    x2 = lms.reshape(rows, T)
    ramp = slope.reshape(1, T)

    # Tile T only when even the minimum-row tile would blow the buffer budget.
    if pack * T * itemsize <= per_buffer:
        tile_t = T
    else:
        tile_t = max(128, (per_buffer // (pack * itemsize)) // 128 * 128)
    tile_r = _row_tile(rows, tile_t * itemsize, per_buffer, pack)
    grid = (pl.cdiv(rows, tile_r), pl.cdiv(T, tile_t))

    out2 = pl.pallas_call(
        _fader_kernel,
        out_shape=jax.ShapeDtypeStruct((rows, T), dtype),
        grid_spec=pltpu.PrefetchScalarGridSpec(
            num_scalar_prefetch=0,
            grid=grid,
            in_specs=[
                pl.BlockSpec((1, tile_t), lambda i, j: (0, j)),        # ramp
                pl.BlockSpec((tile_r, tile_t), lambda i, j: (i, j)),   # x
            ],
            out_specs=pl.BlockSpec((tile_r, tile_t), lambda i, j: (i, j)),
        ),
        compiler_params=_compiler(("parallel", "parallel")),
        input_output_aliases={1: 0},
    )(ramp, x2)

    return out2.reshape(B, F, T)


if __name__ == "__main__":
    key = jax.random.PRNGKey(0)
    k_data, k_fade = jax.random.split(key)

    gain = 1.0

    # Small log-mel-like input: batch=2, freq bins=4, time frames=16
    # (exercises the lane-dense flat path, W = lcm(16, 128) = 128).
    B, F, T = 2, 4, 16
    lms = jax.random.normal(k_data, (B, F, T), dtype=jnp.float32)
    y = jax.block_until_ready(random_linear_fader(lms, k_fade, gain=gain))

    # Reference in plain JAX with the same head/tail draw.
    ht = jax.random.uniform(k_fade, (2,), dtype=jnp.float32, minval=-gain, maxval=gain)
    head, tail = ht[0], ht[1]
    slope_ref = jnp.linspace(head, tail, T, dtype=lms.dtype).reshape(1, 1, T)
    y_ref = lms + slope_ref

    assert y.shape == lms.shape and y.dtype == lms.dtype
    assert jnp.allclose(y, y_ref, atol=1e-5, rtol=1e-5)

    # Also exercise the lane-aligned (rows, T) path.
    B2, F2, T2 = 2, 4, 256
    lms2 = jax.random.normal(k_data, (B2, F2, T2), dtype=jnp.float32)
    y2 = jax.block_until_ready(random_linear_fader(lms2, k_fade, gain=gain))
    slope2 = jnp.linspace(head, tail, T2, dtype=lms2.dtype).reshape(1, 1, T2)
    assert jnp.allclose(y2, lms2 + slope2, atol=1e-5, rtol=1e-5)

    print("KERNEL_OK")
</pallas_src>

<mosaic_0001>
module attributes {stable_mosaic.version = 11 : i64} {
  func.func @_fader_kernel(%arg0: i32, %arg1: memref<1x128xf32, #tpu.memory_space<vmem>>, %arg2: memref<1x128xf32, #tpu.memory_space<vmem>>, %arg3: memref<1x128xf32, #tpu.memory_space<vmem>>) attributes {dimension_semantics = [#tpu.dimension_semantics<parallel>], iteration_bounds = array<i64: 1>, scalar_prefetch = 0 : i64, scratch_operands = 0 : i64, tpu.core_type = #tpu.core_type<tc>, window_params = [{pipeline_mode = #tpu.pipeline_mode<synchronous>, transform_indices = @transform_0, window_bounds = array<i64: 1, 128>}, {transform_indices = @transform_1, window_bounds = array<i64: 1, 128>}, {transform_indices = @transform_2, window_bounds = array<i64: 1, 128>}]} {
    %c0 = arith.constant 0 : index
    %c0_0 = arith.constant 0 : index
    %0 = vector.load %arg2[%c0, %c0_0] : memref<1x128xf32, #tpu.memory_space<vmem>>, vector<1x128xf32>
    %c0_1 = arith.constant 0 : index
    %c0_2 = arith.constant 0 : index
    %1 = vector.load %arg1[%c0_1, %c0_2] : memref<1x128xf32, #tpu.memory_space<vmem>>, vector<1x128xf32>
    %2 = arith.addf %0, %1 : vector<1x128xf32>
    %c0_3 = arith.constant 0 : index
    %c0_4 = arith.constant 0 : index
    %3 = vector.load %arg3[%c0_3, %c0_4] : memref<1x128xf32, #tpu.memory_space<vmem>>, vector<1x128xf32>
    tpu.vector_store %arg3[%c0_3, %c0_4], %2 {strides = array<i32>} : memref<1x128xf32, #tpu.memory_space<vmem>>, vector<1x128xf32>,
    return
  }
  func.func @transform_0(%arg0: i32) -> (i32, i32) {
    %c0_i32 = arith.constant 0 : i32
    %c0_i32_0 = arith.constant 0 : i32
    %c0_i32_1 = arith.constant 0 : i32
    return %c0_i32, %c0_i32_0 : i32, i32
  }
  func.func @transform_1(%arg0: i32) -> (i32, i32) {
    %c0_i32 = arith.constant 0 : i32
    %c0_i32_0 = arith.constant 0 : i32
    return %arg0, %c0_i32 : i32, i32
  }
  func.func @transform_2(%arg0: i32) -> (i32, i32) {
    %c0_i32 = arith.constant 0 : i32
    %c0_i32_0 = arith.constant 0 : i32
    return %arg0, %c0_i32 : i32, i32
  }
}

</mosaic_0001>

<bundles_post_ra>
// kernel: tpu_custom_call.1
= control target key start
LH: loop header
LB: loop body
LE: loop exit
PB: predicated region body
PF: predicated region fallthrough
CT: control target
= control target key end

     0   :  { %7 = vsyncpa [#allocation3], 0  ;;  %s137_s0 = inlined_call_operand.vmem [shape: f32[1,128], index: 0, kind: input, shape index: {}]   ;;  %s138_s1 = inlined_call_operand.hbm [shape: f32[1,128], index: 1, kind: input, shape index: {}, may-alias: {1,2}]   ;;  %s139_s2 = inlined_call_operand.hbm [shape: f32[1,128], index: 2, kind: output, shape index: {}, may-alias: {1,2}]  }
   0x1   :  { %8 = vsyncpa [#allocation4], 0  ;;  %s93_s9 = smov [#allocation2]   ;;  %s45_s13 = scalar_lea.hbm %s138_s1, 16 }
   0x2   :  { %s17_s10 = sshll.u32 %s93_s9, 4  ;;  %p46_p0 = scmp.ne.s32.totalorder %s138_s1, %s45_s13  ;;  %s18_s10 = int_to_ptr.vmem [resolvable:$true] %s17_s10 }
   0x3   :  { %p49_p1 = scmp.lt.u32.totalorder %s45_s13, %s138_s1 }
   0x5   :  { %p51_p2 = pnand %p49_p1, %p46_p0 }
   0x7   :  { %54 = shalt.err (!%p51_p2)
}
   0x8   :  { %s55_s18 = scalar_lea.vmem %s18_s10, 16  ;;  %s59_s19 = scalar_lea.vmem %s18_s10, 32 }
   0x9   :  { %p56_p3 = scmp.ne.s32.totalorder %s18_s10, %s55_s18  ;;  %p60_p4 = scmp.lt.s32.totalorder %s18_s10, %s18_s10 }
   0xa   :  { %p61_p5 = scmp.lt.s32.totalorder %s59_s19, %s55_s18 }
   0xc   :  { %p62_p6 = por %p61_p5, %p60_p4 }
   0xe   :  { %p63_p7 = pnand %p62_p6, %p56_p3 }
  0x10   :  { %66 = shalt.err (!%p63_p7)
}
  0x11   :  { %20 = dma.hbm_to_vmem [thread:$0]  %s138_s1, 16, %s18_s10, [#allocation3]  }
  0x12   :  { %89 = dma.done.wait [#allocation3], 16  }
  0x13   :  { %90 = vsyncadd [#allocation3], 4294967280  ;;  %s94_s22 = smov [#allocation5]   ;;  %v24_v0 = vld [vmem:[#allocation2] sm:$0x1] }
  0x14   :  { %s34_s23 = sshll.u32 %s94_s22, 4  ;;  %v25_v1 = vld [vmem:[%s137_s0] sm:$0x1]  ;;  %s35_s23 = int_to_ptr.vmem [resolvable:$true] %s34_s23 }
  0x15   :  { %v26_v2 = vadd.f32 %v25_v1, %v24_v0  ;;  %s67_s26 = scalar_lea.vmem %s35_s23, 16  ;;  %s71_s27 = scalar_lea.vmem %s35_s23, 32 }
  0x16   :  { %p68_p8 = scmp.ne.s32.totalorder %s35_s23, %s67_s26  ;;  %p72_p9 = scmp.lt.s32.totalorder %s35_s23, %s35_s23 }
  0x17   :  { %27 = vst [vmem:[#allocation5] sm:$0x1] %v26_v2  ;;  %p73_p10 = scmp.lt.s32.totalorder %s71_s27, %s67_s26 }
  0x19   :  { %p74_p11 = por %p73_p10, %p72_p9 }
  0x1b   :  { %p75_p12 = pnand %p74_p11, %p68_p8 }
  0x1d   :  { %78 = shalt.err (!%p75_p12)
}
  0x1e   :  { %s79_s29 = scalar_lea.hbm %s139_s2, 16 }
  0x1f   :  { %p80_p13 = scmp.ne.s32.totalorder %s139_s2, %s79_s29  ;;  %p83_p0 = scmp.lt.u32.totalorder %s79_s29, %s139_s2 }
  0x21   :  { %p85_p1 = pnand %p83_p0, %p80_p13 }
  0x23   :  { %88 = shalt.err (!%p85_p1)
}
  0x24   :  { %37 = dma.vmem_to_hbm [thread:$0]  %s35_s23, 16, %s139_s2, [#allocation4]  }
  0x25   :  { %91 = dma.done.wait [#allocation4], 16  }
  0x26   :  { %92 = vsyncadd [#allocation4], 4294967280 }
  0x27   :  { %41 = vsyncpa [#allocation3], 1 }
  0x28   :  { %42 = vsyncpa [#allocation4], 1 }

</bundles_post_ra>
